<compile_context>
chip_gen: v5e
topology: v5e:2x2
jax: 0.10.0
libtpu: 0.0.40
codegen_flags: <defaults>
</compile_context>

<pallas_src>
import jax
import jax.numpy as jnp
from jax.experimental import pallas as pl
from jax.experimental.pallas import tpu as pltpu


def _round_up(n, m):
    return ((n + m - 1) // m) * m


def _mlp3_kernel(x_ref, w1_ref, b1_ref, w2_ref, b2_ref, w3_ref, b3_ref, out_ref):
    x = x_ref[...]

    # fc1 -> relu  (dropout1 == identity at inference)
    h1 = jnp.dot(x, w1_ref[...], preferred_element_type=jnp.float32) + b1_ref[...]
    h1 = jnp.maximum(h1, 0.0)

    # fc2 -> relu  (dropout2 == identity at inference)
    h2 = jnp.dot(h1.astype(w2_ref.dtype), w2_ref[...],
                 preferred_element_type=jnp.float32) + b2_ref[...]
    h2 = jnp.maximum(h2, 0.0)

    # fc4 -> pred (no sigmoid in the module's forward). w3/b3 are zero-padded on
    # the output dim so that [h2 | pred] is exactly one lane-dense 128-multiple slab.
    pred = jnp.dot(h2.astype(w3_ref.dtype), w3_ref[...],
                   preferred_element_type=jnp.float32) + b3_ref[...]

    out_ref[...] = jnp.concatenate([h2, pred], axis=-1).astype(out_ref.dtype)


def prepare_params(w1_t, b1, w2_t, b2, w3_t, b3, *, compute_dtype=jnp.float32):
    """One-time (hoisted out of the hot path) parameter prep.

    Weights are [in, out]. Casts to the compute dtype and zero-pads fc4's output
    dim so that h (2F cols) and pred (C cols) pack into a single
    round_up(2F + C, 128)-wide output slab. Biases stay float32 (added post-dot).
    """
    cd = compute_dtype
    f2 = w2_t.shape[1]
    c = w3_t.shape[1]
    outw = _round_up(f2 + c, 128)
    predw = outw - f2
    w3p = jnp.zeros((w3_t.shape[0], predw), cd).at[:, :c].set(w3_t.astype(cd))
    b3p = jnp.zeros((1, predw), jnp.float32).at[:, :c].set(
        jnp.asarray(b3, jnp.float32).reshape(1, -1))
    return (w1_t.astype(cd), jnp.asarray(b1, jnp.float32).reshape(1, -1),
            w2_t.astype(cd), jnp.asarray(b2, jnp.float32).reshape(1, -1),
            w3p, b3p)


def mlp3_forward(x, w1, b1, w2, b2, w3p, b3p, *, n_classes, tile_b=1024):
    """x: [B, F]. w1:[F,F], w2:[F,2F], w3p/b3p: fc4 with padded output dim
    (from prepare_params). Returns (h [B, 2F], pred [B, n_classes])."""
    B, F = x.shape
    F2 = w2.shape[1]
    predw = w3p.shape[1]
    outw = F2 + predw
    C = n_classes

    # Batch tiling: n grid steps (even and >= 2 for B >= 16 so both v7x
    # TensorCores get balanced work), tb sublane-aligned (multiple of 8).
    n = (B + tile_b - 1) // tile_b
    if B >= 16:
        n = max(n, 2)
        if n % 2:
            n += 1
    tb = _round_up(-(-B // n), 8)
    Bp = n * tb

    cd = w1.dtype
    xc = x.astype(cd)
    if Bp != B:
        xc = jnp.zeros((Bp, F), cd).at[:B].set(xc)  # at most a few padded rows

    batch_spec = lambda shape: pl.BlockSpec(shape, lambda i: (i, 0))
    resident = lambda shape: pl.BlockSpec(shape, lambda i: (0, 0))

    out = pl.pallas_call(
        _mlp3_kernel,
        grid=(n,),
        in_specs=[
            batch_spec((tb, F)),                          # x tile, unpadded feature dim
            resident((F, F)), resident((1, F)),           # fc1 weight/bias, VMEM-resident
            resident((F, F2)), resident((1, F2)),         # fc2 weight/bias, VMEM-resident
            resident((F2, predw)), resident((1, predw)),  # fc4 weight/bias, VMEM-resident
        ],
        out_specs=batch_spec((tb, outw)),                 # packed [h | pred], lane-dense
        out_shape=jax.ShapeDtypeStruct((Bp, outw), jnp.float32),
        compiler_params=pltpu.CompilerParams(
            dimension_semantics=("parallel",)),           # megacore sharding on v7x
    )(xc, w1, b1, w2, b2, w3p, b3p)

    # Slice the two logical outputs back out of the packed slab.
    return out[:B, :F2], out[:B, F2:F2 + C]


def init_params(key, feature_num, n_classes):
    """Deterministic 'he' (kaiming_normal) init, biases = 0 (matches _init_weights('he'))."""
    k1, k2, k3 = jax.random.split(key, 3)

    def kaiming(k, fan_in, fan_out):
        # PyTorch kaiming_normal_ default: std = sqrt(2 / fan_in), weight shape (out, in).
        std = (2.0 / fan_in) ** 0.5
        w = jax.random.normal(k, (fan_out, fan_in), dtype=jnp.float32) * std
        return w.T  # pass [in, out] to the kernel

    w1_t = kaiming(k1, feature_num, feature_num)
    b1 = jnp.zeros((1, feature_num), jnp.float32)
    w2_t = kaiming(k2, feature_num, feature_num * 2)
    b2 = jnp.zeros((1, feature_num * 2), jnp.float32)
    w3_t = kaiming(k3, feature_num * 2, n_classes)
    b3 = jnp.zeros((1, n_classes), jnp.float32)
    return w1_t, b1, w2_t, b2, w3_t, b3


if __name__ == "__main__":
    key = jax.random.PRNGKey(0)
    kx, kp = jax.random.split(key)

    batch = 8
    feature_num = 32
    n_classes = 4

    x = jax.random.normal(kx, (batch, feature_num), dtype=jnp.float32)
    raw = init_params(kp, feature_num, n_classes)
    params = prepare_params(*raw)  # hoisted out of the hot path, done once

    fwd = jax.jit(mlp3_forward, static_argnames=("n_classes", "tile_b"))
    h, pred = fwd(x, *params, n_classes=n_classes)
    jax.block_until_ready((h, pred))

    # Pure-JAX reference (eval-mode dropout == identity; norm/sigmoid unused in forward).
    w1_t, b1, w2_t, b2, w3_t, b3 = raw
    h_ref = jnp.maximum(x @ w1_t + b1, 0.0)
    h_ref = jnp.maximum(h_ref @ w2_t + b2, 0.0)
    pred_ref = h_ref @ w3_t + b3
    assert h.shape == (batch, feature_num * 2) and pred.shape == (batch, n_classes)
    assert jnp.allclose(h, h_ref, atol=1e-5), "hidden mismatch"
    assert jnp.allclose(pred, pred_ref, atol=1e-5), "pred mismatch"

    # Multi-tile batch: exercises the pipelined grid, megacore split, and batch-pad path.
    big_b = 600
    xb = jax.random.normal(kx, (big_b, feature_num), dtype=jnp.float32)
    hb, pb = fwd(xb, *params, n_classes=n_classes)
    jax.block_until_ready((hb, pb))
    hb_ref = jnp.maximum(xb @ w1_t + b1, 0.0)
    hb_ref = jnp.maximum(hb_ref @ w2_t + b2, 0.0)
    pb_ref = hb_ref @ w3_t + b3
    assert jnp.allclose(hb, hb_ref, atol=1e-5), "big-batch hidden mismatch"
    assert jnp.allclose(pb, pb_ref, atol=1e-5), "big-batch pred mismatch"

    print("KERNEL_OK")
</pallas_src>

<mosaic_0001>
module attributes {stable_mosaic.version = 11 : i64} {
  func.func @_mlp3_kernel(%arg0: i32, %arg1: memref<8x32xf32, #tpu.memory_space<vmem>>, %arg2: memref<32x32xf32, #tpu.memory_space<vmem>>, %arg3: memref<1x32xf32, #tpu.memory_space<vmem>>, %arg4: memref<32x64xf32, #tpu.memory_space<vmem>>, %arg5: memref<1x64xf32, #tpu.memory_space<vmem>>, %arg6: memref<64x64xf32, #tpu.memory_space<vmem>>, %arg7: memref<1x64xf32, #tpu.memory_space<vmem>>, %arg8: memref<8x128xf32, #tpu.memory_space<vmem>>) attributes {dimension_semantics = [#tpu.dimension_semantics<parallel>], iteration_bounds = array<i64: 1>, scalar_prefetch = 0 : i64, scratch_operands = 0 : i64, tpu.core_type = #tpu.core_type<tc>, window_params = [{transform_indices = @transform_0, window_bounds = array<i64: 8, 32>}, {pipeline_mode = #tpu.pipeline_mode<synchronous>, transform_indices = @transform_1, window_bounds = array<i64: 32, 32>}, {pipeline_mode = #tpu.pipeline_mode<synchronous>, transform_indices = @transform_2, window_bounds = array<i64: 1, 32>}, {pipeline_mode = #tpu.pipeline_mode<synchronous>, transform_indices = @transform_3, window_bounds = array<i64: 32, 64>}, {pipeline_mode = #tpu.pipeline_mode<synchronous>, transform_indices = @transform_4, window_bounds = array<i64: 1, 64>}, {pipeline_mode = #tpu.pipeline_mode<synchronous>, transform_indices = @transform_5, window_bounds = array<i64: 64, 64>}, {pipeline_mode = #tpu.pipeline_mode<synchronous>, transform_indices = @transform_6, window_bounds = array<i64: 1, 64>}, {transform_indices = @transform_7, window_bounds = array<i64: 8, 128>}]} {
    %c0 = arith.constant 0 : index
    %c0_0 = arith.constant 0 : index
    %0 = vector.load %arg1[%c0, %c0_0] : memref<8x32xf32, #tpu.memory_space<vmem>>, vector<8x32xf32>
    %c0_1 = arith.constant 0 : index
    %c0_2 = arith.constant 0 : index
    %1 = vector.load %arg2[%c0_1, %c0_2] : memref<32x32xf32, #tpu.memory_space<vmem>>, vector<32x32xf32>
    %cst = arith.constant dense<0.000000e+00> : vector<8x32xf32>
    %2 = tpu.matmul %0, %1, %cst {dimension_numbers = #tpu.dot_dimension_numbers<[1], [0], [0], [1], [0, 0, 1, 1], [], []>} : vector<8x32xf32>, vector<32x32xf32>, vector<8x32xf32> -> vector<8x32xf32>
    %c0_3 = arith.constant 0 : index
    %c0_4 = arith.constant 0 : index
    %3 = vector.load %arg3[%c0_3, %c0_4] : memref<1x32xf32, #tpu.memory_space<vmem>>, vector<1x32xf32>
    %4 = vector.broadcast %3 : vector<1x32xf32> to vector<8x32xf32>
    %5 = arith.addf %2, %4 : vector<8x32xf32>
    %cst_5 = arith.constant 0.000000e+00 : f32
    %6 = vector.broadcast %cst_5 : f32 to vector<8x32xf32>
    %7 = arith.maximumf %5, %6 : vector<8x32xf32>
    %c0_6 = arith.constant 0 : index
    %c0_7 = arith.constant 0 : index
    %8 = vector.load %arg4[%c0_6, %c0_7] : memref<32x64xf32, #tpu.memory_space<vmem>>, vector<32x64xf32>
    %cst_8 = arith.constant dense<0.000000e+00> : vector<8x64xf32>
    %9 = tpu.matmul %7, %8, %cst_8 {dimension_numbers = #tpu.dot_dimension_numbers<[1], [0], [0], [1], [0, 0, 1, 1], [], []>} : vector<8x32xf32>, vector<32x64xf32>, vector<8x64xf32> -> vector<8x64xf32>
    %c0_9 = arith.constant 0 : index
    %c0_10 = arith.constant 0 : index
    %10 = vector.load %arg5[%c0_9, %c0_10] : memref<1x64xf32, #tpu.memory_space<vmem>>, vector<1x64xf32>
    %11 = vector.broadcast %10 : vector<1x64xf32> to vector<8x64xf32>
    %12 = arith.addf %9, %11 : vector<8x64xf32>
    %cst_11 = arith.constant 0.000000e+00 : f32
    %13 = vector.broadcast %cst_11 : f32 to vector<8x64xf32>
    %14 = arith.maximumf %12, %13 : vector<8x64xf32>
    %c0_12 = arith.constant 0 : index
    %c0_13 = arith.constant 0 : index
    %15 = vector.load %arg6[%c0_12, %c0_13] : memref<64x64xf32, #tpu.memory_space<vmem>>, vector<64x64xf32>
    %cst_14 = arith.constant dense<0.000000e+00> : vector<8x64xf32>
    %16 = tpu.matmul %14, %15, %cst_14 {dimension_numbers = #tpu.dot_dimension_numbers<[1], [0], [0], [1], [0, 0, 1, 1], [], []>} : vector<8x64xf32>, vector<64x64xf32>, vector<8x64xf32> -> vector<8x64xf32>
    %c0_15 = arith.constant 0 : index
    %c0_16 = arith.constant 0 : index
    %17 = vector.load %arg7[%c0_15, %c0_16] : memref<1x64xf32, #tpu.memory_space<vmem>>, vector<1x64xf32>
    %18 = vector.broadcast %17 : vector<1x64xf32> to vector<8x64xf32>
    %19 = arith.addf %16, %18 : vector<8x64xf32>
    %20 = tpu.concatenate %14, %19 in 1 : vector<8x64xf32>, vector<8x64xf32> -> vector<8x128xf32>
    %c0_17 = arith.constant 0 : index
    %c0_18 = arith.constant 0 : index
    %21 = vector.load %arg8[%c0_17, %c0_18] : memref<8x128xf32, #tpu.memory_space<vmem>>, vector<8x128xf32>
    tpu.vector_store %arg8[%c0_17, %c0_18], %20 {strides = array<i32>} : memref<8x128xf32, #tpu.memory_space<vmem>>, vector<8x128xf32>,
    return
  }
  func.func @transform_0(%arg0: i32) -> (i32, i32) {
    %c0_i32 = arith.constant 0 : i32
    %c0_i32_0 = arith.constant 0 : i32
    return %arg0, %c0_i32 : i32, i32
  }
  func.func @transform_1(%arg0: i32) -> (i32, i32) {
    %c0_i32 = arith.constant 0 : i32
    %c0_i32_0 = arith.constant 0 : i32
    %c0_i32_1 = arith.constant 0 : i32
    return %c0_i32, %c0_i32_0 : i32, i32
  }
  func.func @transform_2(%arg0: i32) -> (i32, i32) {
    %c0_i32 = arith.constant 0 : i32
    %c0_i32_0 = arith.constant 0 : i32
    %c0_i32_1 = arith.constant 0 : i32
    return %c0_i32, %c0_i32_0 : i32, i32
  }
  func.func @transform_3(%arg0: i32) -> (i32, i32) {
    %c0_i32 = arith.constant 0 : i32
    %c0_i32_0 = arith.constant 0 : i32
    %c0_i32_1 = arith.constant 0 : i32
    return %c0_i32, %c0_i32_0 : i32, i32
  }
  func.func @transform_4(%arg0: i32) -> (i32, i32) {
    %c0_i32 = arith.constant 0 : i32
    %c0_i32_0 = arith.constant 0 : i32
    %c0_i32_1 = arith.constant 0 : i32
    return %c0_i32, %c0_i32_0 : i32, i32
  }
  func.func @transform_5(%arg0: i32) -> (i32, i32) {
    %c0_i32 = arith.constant 0 : i32
    %c0_i32_0 = arith.constant 0 : i32
    %c0_i32_1 = arith.constant 0 : i32
    return %c0_i32, %c0_i32_0 : i32, i32
  }
  func.func @transform_6(%arg0: i32) -> (i32, i32) {
    %c0_i32 = arith.constant 0 : i32
    %c0_i32_0 = arith.constant 0 : i32
    %c0_i32_1 = arith.constant 0 : i32
    return %c0_i32, %c0_i32_0 : i32, i32
  }
  func.func @transform_7(%arg0: i32) -> (i32, i32) {
    %c0_i32 = arith.constant 0 : i32
    %c0_i32_0 = arith.constant 0 : i32
    return %arg0, %c0_i32 : i32, i32
  }
}

</mosaic_0001>

<bundles_post_ra>
// kernel: mlp3_forward.1
= control target key start
LH: loop header
LB: loop body
LE: loop exit
PB: predicated region body
PF: predicated region fallthrough
CT: control target
= control target key end

     0   :  { %12 = vsyncpa [#allocation3], 0  ;;  %s390_s0 = inlined_call_operand.hbm [shape: f32[8,32], index: 0, kind: input, shape index: {}]   ;;  %s391_s1 = inlined_call_operand.hbm [shape: f32[32,32], index: 1, kind: input, shape index: {}]   ;;  %s392_s2 = inlined_call_operand.vmem [shape: f32[1,32], index: 2, kind: input, shape index: {}]   ;;  %s393_s3 = inlined_call_operand.hbm [shape: f32[32,64], index: 3, kind: input, shape index: {}]   ;;  %s394_s4 = inlined_call_operand.vmem [shape: f32[1,64], index: 4, kind: input, shape index: {}]   ;;  %s395_s5 = inlined_call_operand.hbm [shape: f32[64,64], index: 5, kind: input, shape index: {}]   ;;  %s396_s6 = inlined_call_operand.vmem [shape: f32[1,64], index: 6, kind: input, shape index: {}]   ;;  %s397_s7 = inlined_call_operand.vmem [shape: f32[8,128], index: 7, kind: output, shape index: {}]  }
   0x1   :  { %13 = vsyncpa [#allocation5], 0  ;;  %s30_s26 = sshll.u32 %s391_s1, 4  ;;  %s31_s26 = int_to_ptr.hbm [resolvable:$true] %s30_s26 }
   0x2   :  { %14 = vsyncpa [#allocation8], 0  ;;  %s317_s27 = smov [#allocation4]   ;;  %s20_s8 = sshll.u32 %s390_s0, 4  ;;  %s21_s8 = int_to_ptr.hbm [resolvable:$true] %s20_s8 }
   0x3   :  { %s32_s28 = sshll.u32 %s317_s27, 4  ;;  %s318_s9 = smov 128   ;;  %s33_s28 = int_to_ptr.vmem [resolvable:$true] %s32_s28 }
   0x4   :  { %s319_s10 = smov 8   ;;  %s320_s11 = smov [#allocation2]  }
   0x5   :  { %38 = dma.hbm_to_vmem [thread:$0]  %s31_s26, 512, %s33_s28, [#allocation5], %s318_s9, %s318_s9, %s319_s10  }
   0x6   :  { %s22_s12 = sshll.u32 %s320_s11, 4  ;;  %s45_s15 = sshll.u32 %s393_s3, 4  ;;  %s23_s12 = int_to_ptr.vmem [resolvable:$true] %s22_s12  ;;  %s46_s15 = int_to_ptr.hbm [resolvable:$true] %s45_s15 }
   0x7   :  { %25 = dma.hbm_to_vmem [thread:$0]  %s21_s8, 128, %s23_s12, [#allocation3]  }
   0x8   :  { %s60_s17 = sshll.u32 %s395_s5, 4  ;;  %s321_s18 = smov [#allocation6]   ;;  %s61_s17 = int_to_ptr.hbm [resolvable:$true] %s60_s17 }
   0x9   :  { %s47_s19 = sshll.u32 %s321_s18, 4  ;;  %s322_s0 = smov [#allocation7]   ;;  %s48_s19 = int_to_ptr.vmem [resolvable:$true] %s47_s19 }
   0xa   :  { %53 = dma.hbm_to_vmem [thread:$0]  %s46_s15, 512, %s48_s19, [#allocation5], %s318_s9, %s318_s9, %s319_s10  }
   0xb   :  { %s62_s20 = sshll.u32 %s322_s0, 4  ;;  %s63_s20 = int_to_ptr.vmem [resolvable:$true] %s62_s20 }
   0xc   :  { %68 = dma.hbm_to_vmem [thread:$0]  %s61_s17, 1024, %s63_s20, [#allocation8], %s318_s9, %s318_s9, %s319_s10  }
   0xd   :  { %311 = dma.done.wait [#allocation3], 128  }
   0xe   :  { %312 = vsyncadd [#allocation3], 4294967168 }
   0xf   :  { %313 = dma.done.wait [#allocation5], 1024  }
  0x10   :  { %314 = vsyncadd [#allocation5], 4294966272 }
  0x11   :  { %315 = dma.done.wait [#allocation8], 1024  }
  0x12   :  { %316 = vsyncadd [#allocation8], 4294966272  ;;  %v91_v0 = vld [vmem:[#allocation4 + $0x18] sm:$0xff]  ;;  %v90_v1 = vld [vmem:[#allocation4 + $0x10] sm:$0xff]  ;;  %vm96_vm0 = vcmask 261120   ;;  %vm165_vm1 = vcmask 523264  }
  0x13   :  { %112 = vmatpush.msra.mxu0 %v91_v0  ;;  %v124_v2 = vld [vmem:[#allocation6 + $0x18] sm:$0xff]  ;;  %v89_v3 = vld [vmem:[#allocation4 + $0x8] sm:$0xff]  ;;  %v88_v4 = vld [vmem:[#allocation4] sm:$0xff]  ;;  %s323_s24 = smov 64  }
  0x14   :  { %144 = vmatpush.msra.mxu1 %v124_v2  ;;  %v87_v5 = vld [vmem:[#allocation2] sm:$0xff]  ;;  %v123_v6 = vld [vmem:[#allocation6 + $0x10] sm:$0xff]  ;;  %v122_v7 = vld [vmem:[#allocation6 + $0x8] sm:$0xff] }
  0x15   :  { %113 = vmatpush.msra.mxu0 %v90_v1  ;;  %v121_v8 = vld [vmem:[#allocation6] sm:$0xff]  ;;  %v160_v9 = vld [vmem:[#allocation7 + $0x38] sm:$0xff]  ;;  %v159_v10 = vld [vmem:[#allocation7 + $0x30] sm:$0xff] }
  0x16   :  { %145 = vmatpush.msra.mxu1 %v123_v6  ;;  %177 = vmatpush.msra.mxu2 %v160_v9  ;;  %v158_v11 = vld [vmem:[#allocation7 + $0x28] sm:$0xff]  ;;  %v157_v12 = vld [vmem:[#allocation7 + $0x20] sm:$0xff]  ;;  %v156_v13 = vld [vmem:[#allocation7 + $0x18] sm:$0xff] }
  0x17   :  { %114 = vmatpush.msra.mxu0 %v89_v3  ;;  %v212_v14 = vld [vmem:[%s392_s2] ss:$0 sm:$0xff]  ;;  %v155_v18 = vld [vmem:[#allocation7 + $0x10] sm:$0xff]  ;;  %v154_v19 = vld [vmem:[#allocation7 + $0x8] sm:$0xff] }
  0x18   :  { %146 = vmatpush.msra.mxu1 %v122_v7  ;;  %178 = vmatpush.msra.mxu2 %v159_v10  ;;  %v153_v20 = vld [vmem:[#allocation7] sm:$0xff]  ;;  %v213_v21 = vld [vmem:[%s394_s4] ss:$0 sm:$0xff] }
  0x19   :  { %115 = vmatpush.msra.mxu0 %v88_v4  ;;  %v214_v25 = vld [vmem:[%s396_s6] ss:$0 sm:$0xff] }
  0x1a   :  { %202 = vmatmul.msk.f32.vlgmr.msra.gmra.mxu0 %vm96_vm0, %v87_v5  ;;  %147 = vmatpush.msra.mxu1 %v121_v8 }
  0x1b   :  { %179 = vmatpush.msra.mxu2 %v158_v11 }
  0x1d   :  { %180 = vmatpush.msra.mxu2 %v157_v12 }
  0x1f   :  { %181 = vmatpush.msra.mxu2 %v156_v13 }
  0x21   :  { %182 = vmatpush.msra.mxu2 %v155_v18 }
  0x23   :  { %183 = vmatpush.msra.mxu2 %v154_v19 }
  0x25   :  { %184 = vmatpush.msra.mxu2 %v153_v20 }
  0x97   :  { %v117_v15 = vpop.f32.mrf.mxu0 }
  0x98   :  { %v118_v16 = vadd.f32 %v212_v14, %v117_v15 }
  0x9a   :  { %v120_v17 = vmax.f32 %v118_v16, 0.0 }
  0x9c   :  { %203 = vmatmul.msk.f32.vlgmr.msra.gmra.mxu1 %vm96_vm0, %v120_v17 }
 0x119   :  { %v149_v22 = vpop.f32.mrf.mxu1 }
 0x11a   :  { %v150_v23 = vadd.f32 %v213_v21, %v149_v22 }
 0x11c   :  { %v152_v24 = vmax.f32 %v150_v23, 0.0 }
 0x11e   :  { %204 = vmatmul.msk.f32.vlgmr.msra.gmra.mxu2 %vm165_vm1, %v152_v24 }
 0x1a1   :  { %v186_v26 = vpop.f32.mrf.mxu2 }
 0x1a2   :  { %v187_v27 = vadd.f32 %v214_v25, %v186_v26 }
 0x1a4   :  { %190 = vrot.lane.b32.xlu0 %v187_v27, %s323_s24 }
 0x216   :  { %v191_v28 = vpop.permute.xlu0 %190 }
 0x217   :  { %v193_v29 = vsel %vm165_vm1, %v152_v24, %v191_v28 }
 0x218   :  { %194 = vst [vmem:[%s397_s7] sm:$0xff] %v193_v29 }
 0x219   :  { %199 = vsyncpa [#allocation3], 1 }
 0x21a   :  { %200 = vsyncpa [#allocation5], 1 }
 0x21b   :  { %201 = vsyncpa [#allocation8], 1 }

</bundles_post_ra>
